<compile_context>
chip_gen: v7x
topology: tpu7x:2x2x1
jax: 0.10.0
libtpu: 0.0.40
codegen_flags: <defaults>
</compile_context>

<pallas_src>
import functools

import jax
import jax.numpy as jnp
from jax.experimental import pallas as pl
from jax.experimental.pallas import tpu as pltpu

HIDDEN_SIZES = [256, 512, 256, 128]
BN_EPS = 1e-5


def _round_up(n, m):
    return ((n + m - 1) // m) * m


def _mlp_kernel(*refs, num_hidden):
    # refs = [x, (w_i, shift_i) * num_hidden, fin, o]
    x_ref = refs[0]
    o_ref = refs[-1]
    fin_ref = refs[-2]

    h = x_ref[...]                                    # (TB, F) bf16
    for li in range(num_hidden):
        w_ref = refs[1 + 2 * li]                      # (K, N) bf16; BN scale folded in
        s_ref = refs[2 + 2 * li]                      # (1, N) f32; Linear bias + BN shift
        z = jnp.dot(h, w_ref[...], preferred_element_type=jnp.float32)
        h = jnp.maximum(z + s_ref[...], 0.0).astype(jnp.bfloat16)  # ReLU, keep bf16
        # Dropout = identity in eval mode.

    # Final Linear(hidden[-1] -> 1): VPU multiply + XLU lane-reduce in f32.
    out = jnp.sum(h.astype(jnp.float32) * fin_ref[0:1, :], axis=-1, keepdims=True)
    o_ref[...] = (out + fin_ref[1:2, 0:1]).astype(o_ref.dtype)


def _choose_tile(batch, tb_max=2048):
    """Pick (tb, n_tiles, b_pad).

    - n_tiles = cdiv(batch, tb_max), but at least 2 whenever each tile keeps
      >= 8 real rows, so the "parallel" batch axis shards across v7x's two
      TensorCores (no-op on v5e/v6e).
    - tb is derived from cdiv(batch, n_tiles) (rounded to 16 for bf16 sublane
      packing) so padding waste is at most 15 rows, not up to tb-8 rows.
    """
    n_tiles = pl.cdiv(batch, tb_max)
    if batch >= 16:
        n_tiles = max(n_tiles, 2)
    tb = _round_up(pl.cdiv(batch, n_tiles), 16)
    b_pad = n_tiles * tb
    return tb, n_tiles, b_pad


def mlp_forward(x, packed_params, *, tb_max=2048):
    """x: (B, input_size) f32.  packed_params: output of pack_params()."""
    batch, feat = x.shape
    num_hidden = len(HIDDEN_SIZES)

    tb, n_tiles, b_pad = _choose_tile(batch, tb_max)
    # Only batch-scaled HBM stream: ship it bf16; no fan-in padding needed
    # ((tb, feat) blocks are legal because feat equals the full array dim).
    x_p = jnp.pad(x.astype(jnp.bfloat16), ((0, b_pad - batch), (0, 0)))

    kernel = functools.partial(_mlp_kernel, num_hidden=num_hidden)

    # x / out stream over the batch grid; weights & shifts are VMEM-resident
    # (constant block index across grid steps -> fetched once).
    in_specs = [pl.BlockSpec((tb, feat), lambda i: (i, 0))]
    for p in packed_params:
        in_specs.append(pl.BlockSpec(p.shape, lambda i: (0, 0)))

    sizes = [feat] + HIDDEN_SIZES
    flops = 2 * b_pad * (sum(sizes[i] * sizes[i + 1] for i in range(num_hidden))
                         + HIDDEN_SIZES[-1])
    bytes_accessed = int(x_p.size) * 2 + b_pad * 4 + sum(
        int(p.size) * p.dtype.itemsize for p in packed_params)

    out = pl.pallas_call(
        kernel,
        out_shape=jax.ShapeDtypeStruct((b_pad, 1), jnp.float32),
        grid=(n_tiles,),
        in_specs=in_specs,
        out_specs=pl.BlockSpec((tb, 1), lambda i: (i, 0)),
        compiler_params=pltpu.CompilerParams(
            dimension_semantics=("parallel",),
            vmem_limit_bytes=32 * 1024 * 1024),
        cost_estimate=pl.CostEstimate(
            flops=flops, transcendentals=0, bytes_accessed=bytes_accessed),
    )(x_p, *packed_params)
    return out[:batch]


def init_raw_params(key, input_size):
    """PyTorch-shaped parameters: hidden layers (w(in,out), b, gamma, beta, mean, var),
    final layer (w_out(in,1), b_out)."""
    raw = []
    sizes = [input_size] + HIDDEN_SIZES
    for i in range(len(HIDDEN_SIZES)):
        fan_in, fan_out = sizes[i], sizes[i + 1]
        key, kw, kb, kg, kbeta, km, kv = jax.random.split(key, 7)
        bound = 1.0 / jnp.sqrt(fan_in)
        w = jax.random.uniform(kw, (fan_in, fan_out), jnp.float32, -bound, bound)
        b = jax.random.uniform(kb, (1, fan_out), jnp.float32, -bound, bound)
        gamma = 1.0 + 0.1 * jax.random.normal(kg, (1, fan_out), jnp.float32)
        beta = 0.1 * jax.random.normal(kbeta, (1, fan_out), jnp.float32)
        mean = 0.1 * jax.random.normal(km, (1, fan_out), jnp.float32)
        var = 1.0 + 0.1 * jax.random.uniform(kv, (1, fan_out), jnp.float32)
        raw.append((w, b, gamma, beta, mean, var))
    fan_in = HIDDEN_SIZES[-1]
    key, kw, kb = jax.random.split(key, 3)
    bound = 1.0 / jnp.sqrt(fan_in)
    w_out = jax.random.uniform(kw, (fan_in, 1), jnp.float32, -bound, bound)
    b_out = jax.random.uniform(kb, (1, 1), jnp.float32, -bound, bound)
    raw.append((w_out, b_out))
    return raw


def pack_params(raw):
    """Fold eval-mode BN scale into the bf16 matmul weight (w' = w * scale) and
    the Linear bias + BN shift into one (1, H) f32 shift per hidden layer.
    Final Linear ships as one (2, H_last) f32 buffer [w_out_row; b_out]."""
    packed = []
    for (w, b, gamma, beta, mean, var) in raw[:-1]:
        scale = gamma / jnp.sqrt(var + BN_EPS)                      # (1, H)
        shift = b * scale + beta - mean * scale                     # (1, H)
        packed.append((w * scale).astype(jnp.bfloat16))             # (K, H) bf16
        packed.append(shift)                                        # (1, H) f32
    w_out, b_out = raw[-1]
    fin = jnp.concatenate(
        [w_out.T, jnp.broadcast_to(b_out, (1, w_out.shape[0]))], axis=0)  # (2, H_last) f32
    packed.append(fin)
    return packed


def mlp_reference(x, raw):
    """Pure-JAX reference with identical numerics (scale folded into bf16 weights,
    bf16 activations, f32 matmul accumulation)."""
    h = x.astype(jnp.bfloat16)
    for (w, b, gamma, beta, mean, var) in raw[:-1]:
        scale = gamma / jnp.sqrt(var + BN_EPS)
        shift = b * scale + beta - mean * scale
        z = jnp.dot(h, (w * scale).astype(jnp.bfloat16),
                    preferred_element_type=jnp.float32)
        h = jnp.maximum(z + shift, 0.0).astype(jnp.bfloat16)
    w_out, b_out = raw[-1]
    return jnp.dot(h.astype(jnp.float32), w_out) + b_out


if __name__ == "__main__":
    key = jax.random.PRNGKey(0)
    key, kx, kp = jax.random.split(key, 3)

    batch = 8
    input_size = 64
    x = jax.random.normal(kx, (batch, input_size), jnp.float32)
    raw = init_raw_params(kp, input_size)
    packed = pack_params(raw)

    out = mlp_forward(x, packed)
    out = jax.block_until_ready(out)

    ref = mlp_reference(x, raw)
    assert out.shape == (batch, 1), out.shape
    max_diff = jnp.max(jnp.abs(out - ref))
    assert jnp.allclose(out, ref, atol=2e-3, rtol=2e-3), f"max abs diff {max_diff}"

    print("KERNEL_OK")
</pallas_src>

<mosaic_0001>
module attributes {stable_mosaic.version = 11 : i64} {
  func.func @_mlp_kernel(%arg0: i32, %arg1: memref<16x64xbf16, #tpu.memory_space<vmem>>, %arg2: memref<64x256xbf16, #tpu.memory_space<vmem>>, %arg3: memref<1x256xf32, #tpu.memory_space<vmem>>, %arg4: memref<256x512xbf16, #tpu.memory_space<vmem>>, %arg5: memref<1x512xf32, #tpu.memory_space<vmem>>, %arg6: memref<512x256xbf16, #tpu.memory_space<vmem>>, %arg7: memref<1x256xf32, #tpu.memory_space<vmem>>, %arg8: memref<256x128xbf16, #tpu.memory_space<vmem>>, %arg9: memref<1x128xf32, #tpu.memory_space<vmem>>, %arg10: memref<2x128xf32, #tpu.memory_space<vmem>>, %arg11: memref<16x1xf32, #tpu.memory_space<vmem>>) attributes {dimension_semantics = [#tpu.dimension_semantics<parallel>], iteration_bounds = array<i64: 1>, scalar_prefetch = 0 : i64, scratch_operands = 0 : i64, tpu.core_type = #tpu.core_type<tc>, window_params = [{transform_indices = @transform_0, window_bounds = array<i64: 16, 64>}, {pipeline_mode = #tpu.pipeline_mode<synchronous>, transform_indices = @transform_1, window_bounds = array<i64: 64, 256>}, {pipeline_mode = #tpu.pipeline_mode<synchronous>, transform_indices = @transform_2, window_bounds = array<i64: 1, 256>}, {pipeline_mode = #tpu.pipeline_mode<synchronous>, transform_indices = @transform_3, window_bounds = array<i64: 256, 512>}, {pipeline_mode = #tpu.pipeline_mode<synchronous>, transform_indices = @transform_4, window_bounds = array<i64: 1, 512>}, {pipeline_mode = #tpu.pipeline_mode<synchronous>, transform_indices = @transform_5, window_bounds = array<i64: 512, 256>}, {pipeline_mode = #tpu.pipeline_mode<synchronous>, transform_indices = @transform_6, window_bounds = array<i64: 1, 256>}, {pipeline_mode = #tpu.pipeline_mode<synchronous>, transform_indices = @transform_7, window_bounds = array<i64: 256, 128>}, {pipeline_mode = #tpu.pipeline_mode<synchronous>, transform_indices = @transform_8, window_bounds = array<i64: 1, 128>}, {pipeline_mode = #tpu.pipeline_mode<synchronous>, transform_indices = @transform_9, window_bounds = array<i64: 2, 128>}, {transform_indices = @transform_10, window_bounds = array<i64: 16, 1>}]} {
    %c0 = arith.constant 0 : index
    %c0_0 = arith.constant 0 : index
    %0 = vector.load %arg1[%c0, %c0_0] : memref<16x64xbf16, #tpu.memory_space<vmem>>, vector<16x64xbf16>
    %c0_1 = arith.constant 0 : index
    %c0_2 = arith.constant 0 : index
    %1 = vector.load %arg2[%c0_1, %c0_2] : memref<64x256xbf16, #tpu.memory_space<vmem>>, vector<64x256xbf16>
    %cst = arith.constant dense<0.000000e+00> : vector<16x256xf32>
    %2 = tpu.matmul %0, %1, %cst {dimension_numbers = #tpu.dot_dimension_numbers<[1], [0], [0], [1], [0, 0, 1, 1], [], []>} : vector<16x64xbf16>, vector<64x256xbf16>, vector<16x256xf32> -> vector<16x256xf32>
    %c0_3 = arith.constant 0 : index
    %c0_4 = arith.constant 0 : index
    %3 = vector.load %arg3[%c0_3, %c0_4] : memref<1x256xf32, #tpu.memory_space<vmem>>, vector<1x256xf32>
    %4 = vector.broadcast %3 : vector<1x256xf32> to vector<16x256xf32>
    %5 = arith.addf %2, %4 : vector<16x256xf32>
    %cst_5 = arith.constant 0.000000e+00 : f32
    %6 = vector.broadcast %cst_5 : f32 to vector<16x256xf32>
    %7 = arith.maximumf %5, %6 : vector<16x256xf32>
    %8 = arith.truncf %7 : vector<16x256xf32> to vector<16x256xbf16>
    %c0_6 = arith.constant 0 : index
    %c0_7 = arith.constant 0 : index
    %9 = vector.load %arg4[%c0_6, %c0_7] : memref<256x512xbf16, #tpu.memory_space<vmem>>, vector<256x512xbf16>
    %cst_8 = arith.constant dense<0.000000e+00> : vector<16x512xf32>
    %10 = tpu.matmul %8, %9, %cst_8 {dimension_numbers = #tpu.dot_dimension_numbers<[1], [0], [0], [1], [0, 0, 1, 1], [], []>} : vector<16x256xbf16>, vector<256x512xbf16>, vector<16x512xf32> -> vector<16x512xf32>
    %c0_9 = arith.constant 0 : index
    %c0_10 = arith.constant 0 : index
    %11 = vector.load %arg5[%c0_9, %c0_10] : memref<1x512xf32, #tpu.memory_space<vmem>>, vector<1x512xf32>
    %12 = vector.broadcast %11 : vector<1x512xf32> to vector<16x512xf32>
    %13 = arith.addf %10, %12 : vector<16x512xf32>
    %cst_11 = arith.constant 0.000000e+00 : f32
    %14 = vector.broadcast %cst_11 : f32 to vector<16x512xf32>
    %15 = arith.maximumf %13, %14 : vector<16x512xf32>
    %16 = arith.truncf %15 : vector<16x512xf32> to vector<16x512xbf16>
    %c0_12 = arith.constant 0 : index
    %c0_13 = arith.constant 0 : index
    %17 = vector.load %arg6[%c0_12, %c0_13] : memref<512x256xbf16, #tpu.memory_space<vmem>>, vector<512x256xbf16>
    %cst_14 = arith.constant dense<0.000000e+00> : vector<16x256xf32>
    %18 = tpu.matmul %16, %17, %cst_14 {dimension_numbers = #tpu.dot_dimension_numbers<[1], [0], [0], [1], [0, 0, 1, 1], [], []>} : vector<16x512xbf16>, vector<512x256xbf16>, vector<16x256xf32> -> vector<16x256xf32>
    %c0_15 = arith.constant 0 : index
    %c0_16 = arith.constant 0 : index
    %19 = vector.load %arg7[%c0_15, %c0_16] : memref<1x256xf32, #tpu.memory_space<vmem>>, vector<1x256xf32>
    %20 = vector.broadcast %19 : vector<1x256xf32> to vector<16x256xf32>
    %21 = arith.addf %18, %20 : vector<16x256xf32>
    %cst_17 = arith.constant 0.000000e+00 : f32
    %22 = vector.broadcast %cst_17 : f32 to vector<16x256xf32>
    %23 = arith.maximumf %21, %22 : vector<16x256xf32>
    %24 = arith.truncf %23 : vector<16x256xf32> to vector<16x256xbf16>
    %c0_18 = arith.constant 0 : index
    %c0_19 = arith.constant 0 : index
    %25 = vector.load %arg8[%c0_18, %c0_19] : memref<256x128xbf16, #tpu.memory_space<vmem>>, vector<256x128xbf16>
    %cst_20 = arith.constant dense<0.000000e+00> : vector<16x128xf32>
    %26 = tpu.matmul %24, %25, %cst_20 {dimension_numbers = #tpu.dot_dimension_numbers<[1], [0], [0], [1], [0, 0, 1, 1], [], []>} : vector<16x256xbf16>, vector<256x128xbf16>, vector<16x128xf32> -> vector<16x128xf32>
    %c0_21 = arith.constant 0 : index
    %c0_22 = arith.constant 0 : index
    %27 = vector.load %arg9[%c0_21, %c0_22] : memref<1x128xf32, #tpu.memory_space<vmem>>, vector<1x128xf32>
    %28 = vector.broadcast %27 : vector<1x128xf32> to vector<16x128xf32>
    %29 = arith.addf %26, %28 : vector<16x128xf32>
    %cst_23 = arith.constant 0.000000e+00 : f32
    %30 = vector.broadcast %cst_23 : f32 to vector<16x128xf32>
    %31 = arith.maximumf %29, %30 : vector<16x128xf32>
    %32 = arith.truncf %31 : vector<16x128xf32> to vector<16x128xbf16>
    %33 = arith.extf %32 : vector<16x128xbf16> to vector<16x128xf32>
    %c0_24 = arith.constant 0 : index
    %c0_25 = arith.constant 0 : index
    %34 = vector.load %arg10[%c0_24, %c0_25] : memref<2x128xf32, #tpu.memory_space<vmem>>, vector<1x128xf32>
    %35 = vector.broadcast %34 : vector<1x128xf32> to vector<16x128xf32>
    %36 = arith.mulf %33, %35 : vector<16x128xf32>
    %cst_26 = arith.constant dense<0.000000e+00> : vector<16xf32>
    %37 = vector.multi_reduction <add>, %36, %cst_26 [1] : vector<16x128xf32> to vector<16xf32>
    %38 = vector.shape_cast %37 : vector<16xf32> to vector<16x1xf32>
    %c1 = arith.constant 1 : index
    %c0_27 = arith.constant 0 : index
    %39 = vector.load %arg10[%c1, %c0_27] : memref<2x128xf32, #tpu.memory_space<vmem>>, vector<1x1xf32>
    %40 = vector.broadcast %39 : vector<1x1xf32> to vector<16x1xf32>
    %41 = arith.addf %38, %40 : vector<16x1xf32>
    %c0_28 = arith.constant 0 : index
    %c0_29 = arith.constant 0 : index
    %42 = vector.load %arg11[%c0_28, %c0_29] : memref<16x1xf32, #tpu.memory_space<vmem>>, vector<16x1xf32>
    tpu.vector_store %arg11[%c0_28, %c0_29], %41 {strides = array<i32>} : memref<16x1xf32, #tpu.memory_space<vmem>>, vector<16x1xf32>,
    return
  }
  func.func @transform_0(%arg0: i32) -> (i32, i32) {
    %c0_i32 = arith.constant 0 : i32
    %c0_i32_0 = arith.constant 0 : i32
    return %arg0, %c0_i32 : i32, i32
  }
  func.func @transform_1(%arg0: i32) -> (i32, i32) {
    %c0_i32 = arith.constant 0 : i32
    %c0_i32_0 = arith.constant 0 : i32
    %c0_i32_1 = arith.constant 0 : i32
    return %c0_i32, %c0_i32_0 : i32, i32
  }
  func.func @transform_2(%arg0: i32) -> (i32, i32) {
    %c0_i32 = arith.constant 0 : i32
    %c0_i32_0 = arith.constant 0 : i32
    %c0_i32_1 = arith.constant 0 : i32
    return %c0_i32, %c0_i32_0 : i32, i32
  }
  func.func @transform_3(%arg0: i32) -> (i32, i32) {
    %c0_i32 = arith.constant 0 : i32
    %c0_i32_0 = arith.constant 0 : i32
    %c0_i32_1 = arith.constant 0 : i32
    return %c0_i32, %c0_i32_0 : i32, i32
  }
  func.func @transform_4(%arg0: i32) -> (i32, i32) {
    %c0_i32 = arith.constant 0 : i32
    %c0_i32_0 = arith.constant 0 : i32
    %c0_i32_1 = arith.constant 0 : i32
    return %c0_i32, %c0_i32_0 : i32, i32
  }
  func.func @transform_5(%arg0: i32) -> (i32, i32) {
    %c0_i32 = arith.constant 0 : i32
    %c0_i32_0 = arith.constant 0 : i32
    %c0_i32_1 = arith.constant 0 : i32
    return %c0_i32, %c0_i32_0 : i32, i32
  }
  func.func @transform_6(%arg0: i32) -> (i32, i32) {
    %c0_i32 = arith.constant 0 : i32
    %c0_i32_0 = arith.constant 0 : i32
    %c0_i32_1 = arith.constant 0 : i32
    return %c0_i32, %c0_i32_0 : i32, i32
  }
  func.func @transform_7(%arg0: i32) -> (i32, i32) {
    %c0_i32 = arith.constant 0 : i32
    %c0_i32_0 = arith.constant 0 : i32
    %c0_i32_1 = arith.constant 0 : i32
    return %c0_i32, %c0_i32_0 : i32, i32
  }
  func.func @transform_8(%arg0: i32) -> (i32, i32) {
    %c0_i32 = arith.constant 0 : i32
    %c0_i32_0 = arith.constant 0 : i32
    %c0_i32_1 = arith.constant 0 : i32
    return %c0_i32, %c0_i32_0 : i32, i32
  }
  func.func @transform_9(%arg0: i32) -> (i32, i32) {
    %c0_i32 = arith.constant 0 : i32
    %c0_i32_0 = arith.constant 0 : i32
    %c0_i32_1 = arith.constant 0 : i32
    return %c0_i32, %c0_i32_0 : i32, i32
  }
  func.func @transform_10(%arg0: i32) -> (i32, i32) {
    %c0_i32 = arith.constant 0 : i32
    %c0_i32_0 = arith.constant 0 : i32
    return %arg0, %c0_i32 : i32, i32
  }
}

</mosaic_0001>

<bundles_post_ra>
// kernel: tpu_custom_call.1
= control target key start
LH: loop header
LB: loop body
LE: loop exit
PB: predicated region body
PF: predicated region fallthrough
CT: control target
= control target key end

     0   :  { %15 = vsyncpa [#allocation3], 0  ;;  %s2144_s0 = inlined_call_operand.hbm [shape: bf16[16,64], index: 0, kind: input, shape index: {}]   ;;  %s2145_s1 = inlined_call_operand.hbm [shape: bf16[64,256], index: 1, kind: input, shape index: {}]   ;;  %s2146_s2 = inlined_call_operand.vmem [shape: f32[1,256], index: 2, kind: input, shape index: {}]   ;;  %s2147_s3 = inlined_call_operand.hbm [shape: bf16[256,512], index: 3, kind: input, shape index: {}]   ;;  %s2148_s4 = inlined_call_operand.vmem [shape: f32[1,512], index: 4, kind: input, shape index: {}]   ;;  %s2149_s5 = inlined_call_operand.hbm [shape: bf16[512,256], index: 5, kind: input, shape index: {}]   ;;  %s2150_s6 = inlined_call_operand.vmem [shape: f32[1,256], index: 6, kind: input, shape index: {}]   ;;  %s2151_s7 = inlined_call_operand.hbm [shape: bf16[256,128], index: 7, kind: input, shape index: {}]   ;;  %s2152_s8 = inlined_call_operand.vmem [shape: f32[1,128], index: 8, kind: input, shape index: {}]   ;;  %s2153_s9 = inlined_call_operand.vmem [shape: f32[2,128], index: 9, kind: input, shape index: {}]   ;;  %s2154_s10 = inlined_call_operand.vmem [shape: f32[16,1], index: 10, kind: output, shape index: {}]  }
   0x1   :  { %16 = vsyncpa [#allocation5], 0 }
   0x2   :  { %17 = vsyncpa [#allocation8], 0  ;;  %s1961_s13 = smov [#allocation4]   ;;  %s1845_s17 = scalar_lea.hbm %s2145_s1, 1024 }
   0x3   :  { %s35_s14 = sshll.u32 %s1961_s13, 4  ;;  %p1846_p0 = scmp.ne.s32.totalorder %s2145_s1, %s1845_s17  ;;  %s36_s14 = int_to_ptr.vmem [resolvable:$true] %s35_s14 }
   0x4   :  { %p1849_p1 = scmp.lt.u32.totalorder %s1845_s17, %s2145_s1 }
   0x6   :  { %p1851_p2 = pnand %p1849_p1, %p1846_p0 }
   0x8   :  { %1854 = shalt.err (!%p1851_p2)
}
   0x9   :  { %s1855_s22 = scalar_lea.vmem %s36_s14, 1024  ;;  %p1860_p4 = scmp.lt.s32.totalorder %s36_s14, %s36_s14 }
   0xa   :  { %p1856_p3 = scmp.ne.s32.totalorder %s36_s14, %s1855_s22  ;;  %p1861_p5 = scmp.lt.s32.totalorder %s1855_s22, %s1855_s22 }
   0xc   :  { %p1862_p6 = por %p1861_p5, %p1860_p4 }
   0xe   :  { %p1863_p7 = pnand %p1862_p6, %p1856_p3 }
  0x10   :  { %1866 = shalt.err (!%p1863_p7)
}
  0x11   :  { %s1962_s23 = smov 128   ;;  %s1963_s24 = smov 8  }
  0x12   :  { %41 = dma.hbm_to_vmem [thread:$0]  %s2145_s1, 1024, %s36_s14, [#allocation5], %s1962_s23, %s1962_s23, %s1963_s24  }
  0x13   :  { %s1964_s27 = smov [#allocation7]   ;;  %s1965_s29 = smov [#allocation2]  }
  0x14   :  { %s63_s28 = sshll.u32 %s1964_s27, 4  ;;  %s23_s30 = sshll.u32 %s1965_s29, 4  ;;  %s64_s28 = int_to_ptr.vmem [resolvable:$true] %s63_s28  ;;  %s24_s30 = int_to_ptr.vmem [resolvable:$true] %s23_s30 }
  0x15   :  { %s1867_s13 = scalar_lea.hbm %s2149_s5, 8192 }
  0x16   :  { %p1868_p8 = scmp.ne.s32.totalorder %s2149_s5, %s1867_s13  ;;  %p1871_p9 = scmp.lt.u32.totalorder %s1867_s13, %s2149_s5 }
  0x18   :  { %p1873_p10 = pnand %p1871_p9, %p1868_p8 }
  0x1a   :  { %1876 = shalt.err (!%p1873_p10)
}
  0x1b   :  { %s1877_s1 = scalar_lea.vmem %s64_s28, 8192  ;;  %p1882_p12 = scmp.lt.s32.totalorder %s64_s28, %s64_s28 }
  0x1c   :  { %p1878_p11 = scmp.ne.s32.totalorder %s64_s28, %s1877_s1  ;;  %p1883_p13 = scmp.lt.s32.totalorder %s1877_s1, %s1877_s1 }
  0x1e   :  { %p1884_p0 = por %p1883_p13, %p1882_p12 }
  0x20   :  { %p1885_p1 = pnand %p1884_p0, %p1878_p11 }
  0x22   :  { %1888 = shalt.err (!%p1885_p1)
}
  0x23   :  { %69 = dma.hbm_to_vmem [thread:$0]  %s2149_s5, 8192, %s64_s28, [#allocation8], %s1962_s23, %s1962_s23, %s1963_s24  }
  0x24   :  { %s1889_s22 = scalar_lea.hbm %s2144_s0, 128 }
  0x25   :  { %p1890_p2 = scmp.ne.s32.totalorder %s2144_s0, %s1889_s22  ;;  %p1893_p3 = scmp.lt.u32.totalorder %s1889_s22, %s2144_s0 }
  0x27   :  { %p1895_p4 = pnand %p1893_p3, %p1890_p2 }
  0x29   :  { %1898 = shalt.err (!%p1895_p4)
}
  0x2a   :  { %s1899_s11 = scalar_lea.vmem %s24_s30, 128  ;;  %p1904_p6 = scmp.lt.s32.totalorder %s24_s30, %s24_s30 }
  0x2b   :  { %p1900_p5 = scmp.ne.s32.totalorder %s24_s30, %s1899_s11  ;;  %p1905_p7 = scmp.lt.s32.totalorder %s1899_s11, %s1899_s11 }
  0x2d   :  { %p1906_p8 = por %p1905_p7, %p1904_p6 }
  0x2f   :  { %p1907_p9 = pnand %p1906_p8, %p1900_p5 }
  0x31   :  { %1910 = shalt.err (!%p1907_p9)
}
  0x32   :  { %s1966_s5 = smov 64   ;;  %s1967_s23 = smov 4  }
  0x33   :  { %29 = dma.hbm_to_vmem [thread:$0]  %s2144_s0, 128, %s24_s30, [#allocation3], %s1966_s5, %s1966_s5, %s1967_s23  }
  0x34   :  { %s1968_s12 = smov [#allocation6]   ;;  %s1911_s17 = scalar_lea.hbm %s2147_s3, 8192 }
  0x35   :  { %s49_s13 = sshll.u32 %s1968_s12, 4  ;;  %p1912_p10 = scmp.ne.s32.totalorder %s2147_s3, %s1911_s17  ;;  %s50_s13 = int_to_ptr.vmem [resolvable:$true] %s49_s13 }
  0x36   :  { %p1915_p11 = scmp.lt.u32.totalorder %s1911_s17, %s2147_s3 }
  0x38   :  { %p1917_p12 = pnand %p1915_p11, %p1912_p10 }
  0x3a   :  { %1920 = shalt.err (!%p1917_p12)
}
  0x3b   :  { %s1921_s20 = scalar_lea.vmem %s50_s13, 8192  ;;  %p1926_p0 = scmp.lt.s32.totalorder %s50_s13, %s50_s13 }
  0x3c   :  { %p1922_p13 = scmp.ne.s32.totalorder %s50_s13, %s1921_s20  ;;  %p1927_p1 = scmp.lt.s32.totalorder %s1921_s20, %s1921_s20 }
  0x3e   :  { %p1928_p2 = por %p1927_p1, %p1926_p0 }
  0x40   :  { %p1929_p3 = pnand %p1928_p2, %p1922_p13 }
  0x42   :  { %1932 = shalt.err (!%p1929_p3)
}
  0x43   :  { %s1969_s0 = smov 256   ;;  %s1970_s30 = smov 16  }
  0x44   :  { %55 = dma.hbm_to_vmem [thread:$0]  %s2147_s3, 8192, %s50_s13, [#allocation5], %s1969_s0, %s1969_s0, %s1970_s30  }
  0x45   :  { %s1971_s25 = smov [#allocation9]   ;;  %s1933_s11 = scalar_lea.hbm %s2151_s7, 2048 }
  0x46   :  { %s77_s26 = sshll.u32 %s1971_s25, 4  ;;  %p1934_p4 = scmp.ne.s32.totalorder %s2151_s7, %s1933_s11  ;;  %s78_s26 = int_to_ptr.vmem [resolvable:$true] %s77_s26 }
  0x47   :  { %p1937_p5 = scmp.lt.u32.totalorder %s1933_s11, %s2151_s7 }
  0x49   :  { %p1939_p6 = pnand %p1937_p5, %p1934_p4 }
  0x4b   :  { %1942 = shalt.err (!%p1939_p6)
}
  0x4c   :  { %s1943_s16 = scalar_lea.vmem %s78_s26, 2048  ;;  %p1948_p8 = scmp.lt.s32.totalorder %s78_s26, %s78_s26 }
  0x4d   :  { %p1944_p7 = scmp.ne.s32.totalorder %s78_s26, %s1943_s16  ;;  %p1949_p9 = scmp.lt.s32.totalorder %s1943_s16, %s1943_s16 }
  0x4f   :  { %p1950_p10 = por %p1949_p9, %p1948_p8 }
  0x51   :  { %p1951_p11 = pnand %p1950_p10, %p1944_p7 }
  0x53   :  { %1954 = shalt.err (!%p1951_p11)
}
  0x54   :  { %83 = dma.hbm_to_vmem [thread:$0]  %s2151_s7, 2048, %s78_s26, [#allocation8], %s1966_s5, %s1966_s5, %s1967_s23  }
  0x55   :  { %1955 = dma.done.wait [#allocation3], 128  }
  0x56   :  { %1956 = vsyncadd [#allocation3], 4294967168 }
  0x57   :  { %1957 = dma.done.wait [#allocation5], 9216  }
  0x58   :  { %1958 = vsyncadd [#allocation5], 4294958080 }
  0x59   :  { %1959 = dma.done.wait [#allocation8], 10240  }
  0x5a   :  { %1960 = vsyncadd [#allocation8], 4294957056  ;;  %v1972_v0 = vmov 0   ;;  %v1624_v1 = vld [vmem:[#allocation4 + $0x4] ss:$8 sps:$4 sm:$0xff]   ;;  %v1636_v14 = vld [vmem:[#allocation2] sm:$0xff]  }
  0x5b   :  { %207 = vmatprep.mubr.bf16.mxu1 %v1972_v0  ;;  %v1626_v2 = vld [vmem:[#allocation4] ss:$8 sps:$4 sm:$0xff]   ;;  %175 = vmatprep.subr.bf16.mxu1 %v1624_v1  ;;  %v1627_v3 = vld [vmem:[#allocation4 + $0x14] ss:$8 sps:$4 sm:$0xff]   ;;  %v1629_v4 = vld [vmem:[#allocation4 + $0x10] ss:$8 sps:$4 sm:$0xff]   ;;  %v116_v0 = vlaneseq }
  0x5c   :  { %176 = vmatpush1.bf16.msra.mxu1 %v1626_v2  ;;  %v1630_v5 = vld [vmem:[#allocation4 + $0x24] ss:$8 sps:$4 sm:$0xff]   ;;  %v1632_v6 = vld [vmem:[#allocation4 + $0x20] ss:$8 sps:$4 sm:$0xff]   ;;  %v1633_v9 = vld [vmem:[#allocation4 + $0x34] ss:$8 sps:$4 sm:$0xff]  }
  0x5d   :  { %177 = vmatprep.subr.bf16.mxu1 %v1627_v3  ;;  %v1637_v7 = vld [vmem:[#allocation6 + $0x4] ss:$16 sps:$4 sm:$0xff]   ;;  %v1639_v8 = vld [vmem:[#allocation6] ss:$16 sps:$4 sm:$0xff]   ;;  %vm171_vm0 = vcmask 523264   ;;  %v2094_v3 = vshrl.u32 %v116_v0, 7 }
  0x5e   :  { %v1640_v10 = vld [vmem:[#allocation6 + $0x24] ss:$16 sps:$4 sm:$0xff]   ;;  %630 = vmatprep.subr.bf16.mxu0 %v1637_v7  ;;  %v1642_v11 = vld [vmem:[#allocation6 + $0x20] ss:$16 sps:$4 sm:$0xff]   ;;  %v1687_v42 = vld [vmem:[#allocation6 + $0xc] ss:$16 sps:$4 sm:$0xff]  }
  0x5f   :  { %631 = vmatpush1.bf16.msra.mxu0 %v1639_v8  ;;  %v1635_v12 = vld [vmem:[#allocation4 + $0x30] ss:$8 sps:$4 sm:$0xff]   ;;  %v1643_v13 = vld [vmem:[#allocation6 + $0x44] ss:$16 sps:$4 sm:$0xff]   ;;  %v1733_v43 = vld [vmem:[#allocation7] ss:$8 sps:$4 sm:$0xff]  }
  0x60   :  { %178 = vmatpush1.bf16.msra.mxu1 %v1629_v4  ;;  %632 = vmatprep.subr.bf16.mxu0 %v1640_v10  ;;  %v1645_v15 = vld [vmem:[#allocation6 + $0x40] ss:$16 sps:$4 sm:$0xff]   ;;  %v1646_v16 = vld [vmem:[#allocation6 + $0x64] ss:$16 sps:$4 sm:$0xff]   ;;  %v114_v7 = vld [vmem:[%s2146_s2] sm:$0x3] }
  0x61   :  { %179 = vmatprep.subr.bf16.mxu1 %v1630_v5  ;;  %v1648_v17 = vld [vmem:[#allocation6 + $0x60] ss:$16 sps:$4 sm:$0xff]   ;;  %v1649_v18 = vld [vmem:[#allocation6 + $0x84] ss:$16 sps:$4 sm:$0xff]   ;;  %v2103_v8 = vsub.s32 1, %v2094_v3  ;;  %vm1415_vm1 = vcmask 7168  }
  0x62   :  { %v1651_v19 = vld [vmem:[#allocation6 + $0x80] ss:$16 sps:$4 sm:$0xff]   ;;  %v1652_v20 = vld [vmem:[#allocation6 + $0xa4] ss:$16 sps:$4 sm:$0xff]  }
  0x63   :  { %633 = vmatpush1.bf16.msra.mxu0 %v1642_v11  ;;  %v1654_v21 = vld [vmem:[#allocation6 + $0xa0] ss:$16 sps:$4 sm:$0xff]   ;;  %v1655_v22 = vld [vmem:[#allocation6 + $0xc4] ss:$16 sps:$4 sm:$0xff]  }
  0x64   :  { %180 = vmatpush1.bf16.msra.mxu1 %v1632_v6  ;;  %634 = vmatprep.subr.bf16.mxu0 %v1643_v13  ;;  %v1657_v23 = vld [vmem:[#allocation6 + $0xc0] ss:$16 sps:$4 sm:$0xff]   ;;  %v1658_v24 = vld [vmem:[#allocation6 + $0xe4] ss:$16 sps:$4 sm:$0xff]   ;;  %v2097_v6 = vsub.s32 0, %v2094_v3 }
  0x65   :  { %181 = vmatprep.subr.bf16.mxu1 %v1633_v9  ;;  %v1660_v25 = vld [vmem:[#allocation6 + $0xe0] ss:$16 sps:$4 sm:$0xff]   ;;  %v1661_v26 = vld [vmem:[#allocation6 + $0x104] ss:$16 sps:$4 sm:$0xff]  }
  0x66   :  { %v1663_v27 = vld [vmem:[#allocation6 + $0x100] ss:$16 sps:$4 sm:$0xff]   ;;  %v1664_v28 = vld [vmem:[#allocation6 + $0x124] ss:$16 sps:$4 sm:$0xff]   ;;  %v119_v11 = vrot.slane %v114_v7, %v2097_v6 }
  0x67   :  { %635 = vmatpush1.bf16.msra.mxu0 %v1645_v15  ;;  %v1666_v29 = vld [vmem:[#allocation6 + $0x120] ss:$16 sps:$4 sm:$0xff]   ;;  %v1667_v30 = vld [vmem:[#allocation6 + $0x144] ss:$16 sps:$4 sm:$0xff]  }
  0x68   :  { %182 = vmatpush1.bf16.msra.mxu1 %v1635_v12  ;;  %636 = vmatprep.subr.bf16.mxu0 %v1646_v16  ;;  %v1669_v31 = vld [vmem:[#allocation6 + $0x140] ss:$16 sps:$4 sm:$0xff]   ;;  %v1670_v32 = vld [vmem:[#allocation6 + $0x164] ss:$16 sps:$4 sm:$0xff]   ;;  %v123_v12 = vrot.slane %v114_v7, %v2103_v8 }
  0x69   :  { %v1672_v33 = vld [vmem:[#allocation6 + $0x160] ss:$16 sps:$4 sm:$0xff]   ;;  %v1673_v34 = vld [vmem:[#allocation6 + $0x184] ss:$16 sps:$4 sm:$0xff]  }
  0x6a   :  { %v1675_v35 = vld [vmem:[#allocation6 + $0x180] ss:$16 sps:$4 sm:$0xff]   ;;  %v1676_v36 = vld [vmem:[#allocation6 + $0x1a4] ss:$16 sps:$4 sm:$0xff]  }
  0x6b   :  { %1434 = vmatmul.mubr.msk.bf16.vlgmr.msra.gmra.mrb[0].mxu1 %vm171_vm0, %v1636_v14  ;;  %637 = vmatpush1.bf16.msra.mxu0 %v1648_v17  ;;  %v1678_v37 = vld [vmem:[#allocation6 + $0x1a0] ss:$16 sps:$4 sm:$0xff]   ;;  %v1679_v38 = vld [vmem:[#allocation6 + $0x1c4] ss:$16 sps:$4 sm:$0xff]  }
  0x6c   :  { %638 = vmatprep.subr.bf16.mxu0 %v1649_v18  ;;  %v1681_v39 = vld [vmem:[#allocation6 + $0x1c0] ss:$16 sps:$4 sm:$0xff]   ;;  %v1682_v40 = vld [vmem:[#allocation6 + $0x1e4] ss:$16 sps:$4 sm:$0xff]  }
  0x6d   :  { %v1684_v41 = vld [vmem:[#allocation6 + $0x1e0] ss:$16 sps:$4 sm:$0xff]   ;;  %v1735_v44 = vld [vmem:[#allocation7 + $0x4] ss:$8 sps:$4 sm:$0xff]   ;;  %v1738_v45 = vld [vmem:[#allocation7 + $0x14] ss:$8 sps:$4 sm:$0xff]  }
  0x6e   :  { %1124 = vmatprep.subr.bf16.mxu1 %v1735_v44  ;;  %v1736_v46 = vld [vmem:[#allocation7 + $0x10] ss:$8 sps:$4 sm:$0xff]   ;;  %v1741_v47 = vld [vmem:[#allocation7 + $0x24] ss:$8 sps:$4 sm:$0xff]   ;;  %v1739_v48 = vld [vmem:[#allocation7 + $0x20] ss:$8 sps:$4 sm:$0xff]  }
  0x6f   :  { %639 = vmatpush1.bf16.msra.mxu0 %v1651_v19  ;;  %1125 = vmatpush1.bf16.msra.mxu1 %v1733_v43  ;;  %v1744_v49 = vld [vmem:[#allocation7 + $0x34] ss:$8 sps:$4 sm:$0xff]   ;;  %v1742_v50 = vld [vmem:[#allocation7 + $0x30] ss:$8 sps:$4 sm:$0xff]   ;;  %v1747_v51 = vld [vmem:[#allocation7 + $0x44] ss:$8 sps:$4 sm:$0xff]  }
  0x70   :  { %640 = vmatprep.subr.bf16.mxu0 %v1652_v20  ;;  %1126 = vmatprep.subr.bf16.mxu1 %v1738_v45  ;;  %v1745_v52 = vld [vmem:[#allocation7 + $0x40] ss:$8 sps:$4 sm:$0xff]   ;;  %v1750_v53 = vld [vmem:[#allocation7 + $0x54] ss:$8 sps:$4 sm:$0xff]   ;;  %v1748_v54 = vld [vmem:[#allocation7 + $0x50] ss:$8 sps:$4 sm:$0xff]  }
  0x71   :  { %v1753_v55 = vld [vmem:[#allocation7 + $0x64] ss:$8 sps:$4 sm:$0xff]   ;;  %v1751_v56 = vld [vmem:[#allocation7 + $0x60] ss:$8 sps:$4 sm:$0xff]   ;;  %v1756_v57 = vld [vmem:[#allocation7 + $0x74] ss:$8 sps:$4 sm:$0xff]  }
  0x72   :  { %v1754_v58 = vld [vmem:[#allocation7 + $0x70] ss:$8 sps:$4 sm:$0xff]   ;;  %v1759_v59 = vld [vmem:[#allocation7 + $0x84] ss:$8 sps:$4 sm:$0xff]   ;;  %v1757_v60 = vld [vmem:[#allocation7 + $0x80] ss:$8 sps:$4 sm:$0xff]  }
  0x73   :  { %641 = vmatpush1.bf16.msra.mxu0 %v1654_v21  ;;  %1127 = vmatpush1.bf16.msra.mxu1 %v1736_v46  ;;  %v1762_v61 = vld [vmem:[#allocation7 + $0x94] ss:$8 sps:$4 sm:$0xff]   ;;  %v1760_v62 = vld [vmem:[#allocation7 + $0x90] ss:$8 sps:$4 sm:$0xff]   ;;  %v1765_v63 = vld [vmem:[#allocation7 + $0xa4] ss:$8 sps:$4 sm:$0xff]  }
  0x74   :  { %642 = vmatprep.subr.bf16.mxu0 %v1655_v22  ;;  %1128 = vmatprep.subr.bf16.mxu1 %v1741_v47  ;;  %v1763_v1 = vld [vmem:[#allocation7 + $0xa0] ss:$8 sps:$4 sm:$0xff]   ;;  %v1768_v2 = vld [vmem:[#allocation7 + $0xb4] ss:$8 sps:$4 sm:$0xff]   ;;  %v1766_v4 = vld [vmem:[#allocation7 + $0xb0] ss:$8 sps:$4 sm:$0xff]  }
  0x75   :  { %v1771_v5 = vld [vmem:[#allocation7 + $0xc4] ss:$8 sps:$4 sm:$0xff]   ;;  %v1769_v9 = vld [vmem:[#allocation7 + $0xc0] ss:$8 sps:$4 sm:$0xff]   ;;  %v1774_v10 = vld [vmem:[#allocation7 + $0xd4] ss:$8 sps:$4 sm:$0xff]  }
  0x76   :  { %v1772_v13 = vld [vmem:[#allocation7 + $0xd0] ss:$8 sps:$4 sm:$0xff]   ;;  %v1711_v43 = vld [vmem:[#allocation6 + $0x10c] ss:$16 sps:$4 sm:$0xff]   ;;  %v1829_v0 = vld [vmem:[#allocation9 + $0x40] sm:$0xff]  }
  0x77   :  { %643 = vmatpush1.bf16.msra.mxu0 %v1657_v23  ;;  %1129 = vmatpush1.bf16.msra.mxu1 %v1739_v48  ;;  %v1709_v44 = vld [vmem:[#allocation6 + $0x108] ss:$16 sps:$4 sm:$0xff]   ;;  %v1714_v45 = vld [vmem:[#allocation6 + $0x12c] ss:$16 sps:$4 sm:$0xff]   ;;  %v1834_v7 = vld [vmem:[#allocation9 + $0x10] sm:$0xff]  }
  0x78   :  { %644 = vmatprep.subr.bf16.mxu0 %v1658_v24  ;;  %1130 = vmatprep.subr.bf16.mxu1 %v1744_v49  ;;  %v1712_v46 = vld [vmem:[#allocation6 + $0x128] ss:$16 sps:$4 sm:$0xff]   ;;  %v1717_v47 = vld [vmem:[#allocation6 + $0x14c] ss:$16 sps:$4 sm:$0xff]  }
  0x79   :  { %v1715_v48 = vld [vmem:[#allocation6 + $0x148] ss:$16 sps:$4 sm:$0xff]   ;;  %v1720_v49 = vld [vmem:[#allocation6 + $0x16c] ss:$16 sps:$4 sm:$0xff]  }
  0x7b   :  { %645 = vmatpush1.bf16.msra.mxu0 %v1660_v25  ;;  %1131 = vmatpush1.bf16.msra.mxu1 %v1742_v50  ;;  %v1718_v50 = vld [vmem:[#allocation6 + $0x168] ss:$16 sps:$4 sm:$0xff]  }
  0x7c   :  { %646 = vmatprep.subr.bf16.mxu0 %v1661_v26  ;;  %1132 = vmatprep.subr.bf16.mxu1 %v1747_v51  ;;  %v1723_v51 = vld [vmem:[#allocation6 + $0x18c] ss:$16 sps:$4 sm:$0xff]  }
  0x7f   :  { %647 = vmatpush1.bf16.msra.mxu0 %v1663_v27  ;;  %1133 = vmatpush1.bf16.msra.mxu1 %v1745_v52  ;;  %v1721_v52 = vld [vmem:[#allocation6 + $0x188] ss:$16 sps:$4 sm:$0xff]  }
  0x80   :  { %648 = vmatprep.subr.bf16.mxu0 %v1664_v28  ;;  %1134 = vmatprep.subr.bf16.mxu1 %v1750_v53  ;;  %v1685_v28 = vld [vmem:[#allocation6 + $0x8] ss:$16 sps:$4 sm:$0xff]   ;;  %v1726_v53 = vld [vmem:[#allocation6 + $0x1ac] ss:$16 sps:$4 sm:$0xff]  }
  0x83   :  { %649 = vmatpush1.bf16.msra.mxu0 %v1666_v29  ;;  %1135 = vmatpush1.bf16.msra.mxu1 %v1748_v54  ;;  %v1690_v29 = vld [vmem:[#allocation6 + $0x2c] ss:$16 sps:$4 sm:$0xff]   ;;  %v1724_v54 = vld [vmem:[#allocation6 + $0x1a8] ss:$16 sps:$4 sm:$0xff]  }
  0x84   :  { %650 = vmatprep.subr.bf16.mxu0 %v1667_v30  ;;  %1136 = vmatprep.subr.bf16.mxu1 %v1753_v55  ;;  %v1688_v30 = vld [vmem:[#allocation6 + $0x28] ss:$16 sps:$4 sm:$0xff]   ;;  %v1729_v55 = vld [vmem:[#allocation6 + $0x1cc] ss:$16 sps:$4 sm:$0xff]  }
  0x87   :  { %651 = vmatpush1.bf16.msra.mxu0 %v1669_v31  ;;  %1137 = vmatpush1.bf16.msra.mxu1 %v1751_v56  ;;  %v1693_v31 = vld [vmem:[#allocation6 + $0x4c] ss:$16 sps:$4 sm:$0xff]   ;;  %v1727_v56 = vld [vmem:[#allocation6 + $0x1c8] ss:$16 sps:$4 sm:$0xff]  }
  0x88   :  { %652 = vmatprep.subr.bf16.mxu0 %v1670_v32  ;;  %1138 = vmatprep.subr.bf16.mxu1 %v1756_v57  ;;  %v1691_v32 = vld [vmem:[#allocation6 + $0x48] ss:$16 sps:$4 sm:$0xff]   ;;  %v1732_v57 = vld [vmem:[#allocation6 + $0x1ec] ss:$16 sps:$4 sm:$0xff]  }
  0x8b   :  { %653 = vmatpush1.bf16.msra.mxu0 %v1672_v33  ;;  %1139 = vmatpush1.bf16.msra.mxu1 %v1754_v58  ;;  %v1696_v33 = vld [vmem:[#allocation6 + $0x6c] ss:$16 sps:$4 sm:$0xff]   ;;  %v1730_v58 = vld [vmem:[#allocation6 + $0x1e8] ss:$16 sps:$4 sm:$0xff]  }
  0x8c   :  { %654 = vmatprep.subr.bf16.mxu0 %v1673_v34  ;;  %1140 = vmatprep.subr.bf16.mxu1 %v1759_v59  ;;  %v1694_v34 = vld [vmem:[#allocation6 + $0x68] ss:$16 sps:$4 sm:$0xff]   ;;  %v1777_v59 = vld [vmem:[#allocation7 + $0xe4] ss:$8 sps:$4 sm:$0xff]  }
  0x8f   :  { %655 = vmatpush1.bf16.msra.mxu0 %v1675_v35  ;;  %1141 = vmatpush1.bf16.msra.mxu1 %v1757_v60  ;;  %v1699_v35 = vld [vmem:[#allocation6 + $0x8c] ss:$16 sps:$4 sm:$0xff]   ;;  %v1775_v60 = vld [vmem:[#allocation7 + $0xe0] ss:$8 sps:$4 sm:$0xff]  }
  0x90   :  { %656 = vmatprep.subr.bf16.mxu0 %v1676_v36  ;;  %1142 = vmatprep.subr.bf16.mxu1 %v1762_v61  ;;  %v1697_v36 = vld [vmem:[#allocation6 + $0x88] ss:$16 sps:$4 sm:$0xff]   ;;  %v1780_v61 = vld [vmem:[#allocation7 + $0xf4] ss:$8 sps:$4 sm:$0xff]  }
  0x93   :  { %657 = vmatpush1.bf16.msra.mxu0 %v1678_v37  ;;  %1143 = vmatpush1.bf16.msra.mxu1 %v1760_v62  ;;  %v1702_v37 = vld [vmem:[#allocation6 + $0xac] ss:$16 sps:$4 sm:$0xff]   ;;  %v1778_v62 = vld [vmem:[#allocation7 + $0xf0] ss:$8 sps:$4 sm:$0xff]  }
  0x94   :  { %658 = vmatprep.subr.bf16.mxu0 %v1679_v38  ;;  %1144 = vmatprep.subr.bf16.mxu1 %v1765_v63  ;;  %v1700_v38 = vld [vmem:[#allocation6 + $0xa8] ss:$16 sps:$4 sm:$0xff]   ;;  %v1783_v63 = vld [vmem:[#allocation7 + $0x104] ss:$8 sps:$4 sm:$0xff]  }
  0x97   :  { %659 = vmatpush1.bf16.msra.mxu0 %v1681_v39  ;;  %1145 = vmatpush1.bf16.msra.mxu1 %v1763_v1  ;;  %v1705_v39 = vld [vmem:[#allocation6 + $0xcc] ss:$16 sps:$4 sm:$0xff]   ;;  %v1830_v1 = vld [vmem:[#allocation9] sm:$0xff]  }
  0x98   :  { %660 = vmatprep.subr.bf16.mxu0 %v1682_v40  ;;  %1146 = vmatprep.subr.bf16.mxu1 %v1768_v2  ;;  %v1703_v40 = vld [vmem:[#allocation6 + $0xc8] ss:$16 sps:$4 sm:$0xff]  }
  0x99   :  { %v1831_v2 = vld [vmem:[#allocation9 + $0x48] sm:$0xff]  }
  0x9b   :  { %661 = vmatpush1.bf16.msra.mxu0 %v1684_v41  ;;  %1147 = vmatpush1.bf16.msra.mxu1 %v1766_v4  ;;  %v1708_v41 = vld [vmem:[#allocation6 + $0xec] ss:$16 sps:$4 sm:$0xff]  }
  0x9c   :  { %673 = vmatprep.subr.bf16.mxu0 %v1687_v42  ;;  %1148 = vmatprep.subr.bf16.mxu1 %v1771_v5  ;;  %v1706_v42 = vld [vmem:[#allocation6 + $0xe8] ss:$16 sps:$4 sm:$0xff]   ;;  %v1833_v5 = vld [vmem:[#allocation9 + $0x50] sm:$0xff]  }
  0x9d   :  { %v1832_v4 = vld [vmem:[#allocation9 + $0x8] sm:$0xff]  }
  0x9f   :  { %1149 = vmatpush1.bf16.msra.mxu1 %v1769_v9  ;;  %v1835_v9 = vld [vmem:[#allocation9 + $0x58] sm:$0xff]  }
  0xa0   :  { %1150 = vmatprep.subr.bf16.mxu1 %v1774_v10  ;;  %v1836_v10 = vld [vmem:[#allocation9 + $0x18] sm:$0xff]  }
  0xa3   :  { %1151 = vmatpush1.bf16.msra.mxu1 %v1772_v13  ;;  %v1839_v13 = vld [vmem:[#allocation9 + $0x68] sm:$0xff]  }
  0xa4   :  { %1152 = vmatprep.subr.bf16.mxu1 %v1777_v59  ;;  %v1820_v59 = vld [vmem:[#allocation7 + $0x1d0] ss:$8 sps:$4 sm:$0xff]  }
  0xa7   :  { %1153 = vmatpush1.bf16.msra.mxu1 %v1775_v60 }
  0xa8   :  { %1154 = vmatprep.subr.bf16.mxu1 %v1780_v61  ;;  %v1825_v61 = vld [vmem:[#allocation7 + $0x1e4] ss:$8 sps:$4 sm:$0xff]  }
  0xab   :  { %1155 = vmatpush1.bf16.msra.mxu1 %v1778_v62 }
  0xac   :  { %1167 = vmatprep.subr.bf16.mxu1 %v1783_v63 }
 0x13e   :  { %v209_v14 = vpop.f32.mrb[0].mxu1 }
 0x13f   :  { %v210_v15 = vadd.f32 %v209_v14, %v119_v11  ;;  %v211_v16 = vpop.f32.mrb[1].mxu1  ;;  %v2114_v14 = vld [vmem:[%s2148_s4] sm:$0xf] }
 0x140   :  { %v212_v17 = vadd.f32 %v211_v16, %v123_v12  ;;  %v213_v18 = vpop.f32.mrb[2].mxu1  ;;  %v297_v16 = vrot.slane %v2114_v14, %v2103_v8 }
 0x141   :  { %v214_v19 = vadd.f32 %v213_v18, %v119_v11  ;;  %v215_v20 = vpop.f32.mrb[3].mxu1  ;;  %v218_v22 = vmax.f32 %v210_v15, 0.0  ;;  %v1837_v11 = vld [vmem:[#allocation9 + $0x60] sm:$0xff]   ;;  %v293_v15 = vrot.slane %v2114_v14, %v2097_v6 }
 0x142   :  { %v216_v21 = vadd.f32 %v215_v20, %v123_v12  ;;  %v219_v24 = vmax.f32 %v212_v17, 0.0  ;;  %v1838_v12 = vld [vmem:[#allocation9 + $0x20] sm:$0xff]  }
 0x143   :  { %v220_v23 = vmax.f32 %v214_v19, 0.0 }
 0x144   :  { %v221_v25 = vmax.f32 %v216_v21, 0.0 }
 0x145   :  { %v2107_v26 = vpack.c.bf16 %v220_v23, %v218_v22 }
 0x146   :  { %v223_v27 = vpack.c.bf16 %v221_v25, %v219_v24 }
 0x148   :  { %662 = vmatprep.mubr.bf16.mxu0 %v223_v27 }
 0x149   :  { %663 = vmatmul.mubr.bf16.vlgmr.msra.gmra.mrb[0].mxu0 %v2107_v26 }
 0x14a   :  { %674 = vmatpush1.bf16.msra.mxu0 %v1685_v28  ;;  %705 = vmatprep.mubr.bf16.mxu0 %v223_v27 }
 0x14b   :  { %675 = vmatprep.subr.bf16.mxu0 %v1690_v29 }
 0x14e   :  { %676 = vmatpush1.bf16.msra.mxu0 %v1688_v30 }
 0x14f   :  { %677 = vmatprep.subr.bf16.mxu0 %v1693_v31  ;;  %v1781_v31 = vld [vmem:[#allocation7 + $0x100] ss:$8 sps:$4 sm:$0xff]  }
 0x152   :  { %678 = vmatpush1.bf16.msra.mxu0 %v1691_v32  ;;  %v1786_v32 = vld [vmem:[#allocation7 + $0x114] ss:$8 sps:$4 sm:$0xff]  }
 0x153   :  { %679 = vmatprep.subr.bf16.mxu0 %v1696_v33  ;;  %v1784_v33 = vld [vmem:[#allocation7 + $0x110] ss:$8 sps:$4 sm:$0xff]  }
 0x156   :  { %680 = vmatpush1.bf16.msra.mxu0 %v1694_v34  ;;  %v1789_v34 = vld [vmem:[#allocation7 + $0x124] ss:$8 sps:$4 sm:$0xff]  }
 0x157   :  { %681 = vmatprep.subr.bf16.mxu0 %v1699_v35  ;;  %v1787_v35 = vld [vmem:[#allocation7 + $0x120] ss:$8 sps:$4 sm:$0xff]  }
 0x15a   :  { %682 = vmatpush1.bf16.msra.mxu0 %v1697_v36  ;;  %v1792_v36 = vld [vmem:[#allocation7 + $0x134] ss:$8 sps:$4 sm:$0xff]  }
 0x15b   :  { %683 = vmatprep.subr.bf16.mxu0 %v1702_v37  ;;  %v1790_v37 = vld [vmem:[#allocation7 + $0x130] ss:$8 sps:$4 sm:$0xff]  }
 0x15e   :  { %684 = vmatpush1.bf16.msra.mxu0 %v1700_v38  ;;  %v1795_v38 = vld [vmem:[#allocation7 + $0x144] ss:$8 sps:$4 sm:$0xff]  }
 0x15f   :  { %685 = vmatprep.subr.bf16.mxu0 %v1705_v39  ;;  %v1793_v39 = vld [vmem:[#allocation7 + $0x140] ss:$8 sps:$4 sm:$0xff]  }
 0x162   :  { %686 = vmatpush1.bf16.msra.mxu0 %v1703_v40  ;;  %v1798_v40 = vld [vmem:[#allocation7 + $0x154] ss:$8 sps:$4 sm:$0xff]  }
 0x163   :  { %687 = vmatprep.subr.bf16.mxu0 %v1708_v41  ;;  %v1796_v41 = vld [vmem:[#allocation7 + $0x150] ss:$8 sps:$4 sm:$0xff]  }
 0x166   :  { %688 = vmatpush1.bf16.msra.mxu0 %v1706_v42  ;;  %v1801_v42 = vld [vmem:[#allocation7 + $0x164] ss:$8 sps:$4 sm:$0xff]  }
 0x167   :  { %689 = vmatprep.subr.bf16.mxu0 %v1711_v43  ;;  %v1799_v43 = vld [vmem:[#allocation7 + $0x160] ss:$8 sps:$4 sm:$0xff]  }
 0x16a   :  { %690 = vmatpush1.bf16.msra.mxu0 %v1709_v44  ;;  %v1804_v44 = vld [vmem:[#allocation7 + $0x174] ss:$8 sps:$4 sm:$0xff]  }
 0x16b   :  { %691 = vmatprep.subr.bf16.mxu0 %v1714_v45  ;;  %v1802_v45 = vld [vmem:[#allocation7 + $0x170] ss:$8 sps:$4 sm:$0xff]  }
 0x16e   :  { %692 = vmatpush1.bf16.msra.mxu0 %v1712_v46  ;;  %v1807_v46 = vld [vmem:[#allocation7 + $0x184] ss:$8 sps:$4 sm:$0xff]  }
 0x16f   :  { %693 = vmatprep.subr.bf16.mxu0 %v1717_v47  ;;  %v1805_v47 = vld [vmem:[#allocation7 + $0x180] ss:$8 sps:$4 sm:$0xff]  }
 0x172   :  { %694 = vmatpush1.bf16.msra.mxu0 %v1715_v48  ;;  %v1810_v48 = vld [vmem:[#allocation7 + $0x194] ss:$8 sps:$4 sm:$0xff]  }
 0x173   :  { %695 = vmatprep.subr.bf16.mxu0 %v1720_v49  ;;  %v1808_v49 = vld [vmem:[#allocation7 + $0x190] ss:$8 sps:$4 sm:$0xff]  }
 0x176   :  { %696 = vmatpush1.bf16.msra.mxu0 %v1718_v50  ;;  %v1813_v50 = vld [vmem:[#allocation7 + $0x1a4] ss:$8 sps:$4 sm:$0xff]  }
 0x177   :  { %697 = vmatprep.subr.bf16.mxu0 %v1723_v51  ;;  %v1811_v51 = vld [vmem:[#allocation7 + $0x1a0] ss:$8 sps:$4 sm:$0xff]  }
 0x17a   :  { %698 = vmatpush1.bf16.msra.mxu0 %v1721_v52  ;;  %v1816_v52 = vld [vmem:[#allocation7 + $0x1b4] ss:$8 sps:$4 sm:$0xff]  }
 0x17b   :  { %699 = vmatprep.subr.bf16.mxu0 %v1726_v53  ;;  %v1814_v53 = vld [vmem:[#allocation7 + $0x1b0] ss:$8 sps:$4 sm:$0xff]  }
 0x17e   :  { %700 = vmatpush1.bf16.msra.mxu0 %v1724_v54  ;;  %v1819_v54 = vld [vmem:[#allocation7 + $0x1c4] ss:$8 sps:$4 sm:$0xff]  }
 0x17f   :  { %701 = vmatprep.subr.bf16.mxu0 %v1729_v55  ;;  %v1817_v55 = vld [vmem:[#allocation7 + $0x1c0] ss:$8 sps:$4 sm:$0xff]  }
 0x182   :  { %702 = vmatpush1.bf16.msra.mxu0 %v1727_v56  ;;  %v1822_v56 = vld [vmem:[#allocation7 + $0x1d4] ss:$8 sps:$4 sm:$0xff]  }
 0x183   :  { %703 = vmatprep.subr.bf16.mxu0 %v1732_v57  ;;  %v300_v57 = vsub.s32 2, %v2094_v3 }
 0x185   :  { %v301_v60 = vrot.slane %v2114_v14, %v300_v57 }
 0x186   :  { %704 = vmatpush1.bf16.msra.mxu0 %v1730_v58  ;;  %v304_v58 = vsub.s32 3, %v2094_v3 }
 0x187   :  { %1582 = vmatprep.subr.bf16.mxu0 %v1829_v0  ;;  %v1823_v0 = vld [vmem:[#allocation7 + $0x1e0] ss:$8 sps:$4 sm:$0xff]  }
 0x188   :  { %v305_v62 = vrot.slane %v2114_v14, %v304_v58 }
 0x189   :  { %706 = vmatmul.mubr.bf16.vlgmr.msra.gmra.mrb[4].mxu0 %v2107_v26 }
 0x18a   :  { %1583 = vmatpush3.bf16.msra.mxu0 %v1830_v1 }
 0x18b   :  { %1584 = vmatprep.subr.bf16.mxu0 %v1831_v2 }
 0x18e   :  { %1585 = vmatpush3.bf16.msra.mxu0 %v1832_v4  ;;  %v1828_v4 = vld [vmem:[#allocation7 + $0x1f4] ss:$8 sps:$4 sm:$0xff]  }
 0x18f   :  { %1586 = vmatprep.subr.bf16.mxu0 %v1833_v5 }
 0x192   :  { %1587 = vmatpush3.bf16.msra.mxu0 %v1834_v7 }
 0x193   :  { %1588 = vmatprep.subr.bf16.mxu0 %v1835_v9 }
 0x196   :  { %1589 = vmatpush3.bf16.msra.mxu0 %v1836_v10 }
 0x197   :  { %1590 = vmatprep.subr.bf16.mxu0 %v1837_v11  ;;  %v1826_v11 = vld [vmem:[#allocation7 + $0x1f0] ss:$8 sps:$4 sm:$0xff]  }
 0x19a   :  { %1591 = vmatpush3.bf16.msra.mxu0 %v1838_v12 }
 0x19b   :  { %1592 = vmatprep.subr.bf16.mxu0 %v1839_v13 }
 0x21c   :  { %v664_v17 = vpop.f32.mrb[0].mxu0 }
 0x21d   :  { %v665_v18 = vadd.f32 %v664_v17, %v293_v15  ;;  %v666_v19 = vpop.f32.mrb[1].mxu0 }
 0x21e   :  { %v667_v20 = vadd.f32 %v666_v19, %v297_v16  ;;  %v668_v21 = vpop.f32.mrb[2].mxu0  ;;  %v1841_v19 = vld [vmem:[#allocation9 + $0x70] sm:$0xff]  }
 0x21f   :  { %v669_v22 = vadd.f32 %v668_v21, %v293_v15  ;;  %v670_v23 = vpop.f32.mrb[3].mxu0  ;;  %v716_v25 = vmax.f32 %v665_v18, 0.0  ;;  %v1840_v18 = vld [vmem:[#allocation9 + $0x28] sm:$0xff]   ;;  %v1843_v21 = vld [vmem:[#allocation9 + $0x78] sm:$0xff]  }
 0x220   :  { %v671_v24 = vadd.f32 %v670_v23, %v297_v16  ;;  %v717_v27 = vmax.f32 %v667_v20, 0.0  ;;  %1593 = vmatpush3.bf16.msra.mxu0 %v1840_v18  ;;  %v1842_v20 = vld [vmem:[#allocation9 + $0x30] sm:$0xff]   ;;  %v792_v23 = vld [vmem:[%s2150_s6] sm:$0x3] }
 0x221   :  { %v720_v26 = vmax.f32 %v669_v22, 0.0  ;;  %1594 = vmatprep.subr.bf16.mxu0 %v1841_v19  ;;  %v1844_v22 = vld [vmem:[#allocation9 + $0x38] sm:$0xff]  }
 0x222   :  { %v721_v28 = vmax.f32 %v671_v24, 0.0  ;;  %v797_v24 = vrot.slane %v792_v23, %v2097_v6  ;;  %v1563_v6 = vld [vmem:[%s2152_s8] ss:$0 sm:$0xff] }
 0x223   :  { %v724_v29 = vpack.c.bf16 %v720_v26, %v716_v25  ;;  %v801_v25 = vrot.slane %v792_v23, %v2103_v8 }
 0x224   :  { %v725_v30 = vpack.c.bf16 %v721_v28, %v717_v27  ;;  %1595 = vmatpush3.bf16.msra.mxu0 %v1842_v20 }
 0x225   :  { %1596 = vmatprep.subr.bf16.mxu0 %v1843_v21 }
 0x226   :  { %1156 = vmatprep.mubr.bf16.mxu1 %v725_v30 }
 0x227   :  { %1157 = vmatmul.mubr.bf16.vlgmr.msra.gmra.mrb[4].mxu1 %v724_v29 }
 0x228   :  { %1168 = vmatpush1.bf16.msra.mxu1 %v1781_v31  ;;  %1597 = vmatpush3.bf16.msra.mxu0 %v1844_v22 }
 0x229   :  { %1169 = vmatprep.subr.bf16.mxu1 %v1786_v32 }
 0x22c   :  { %1170 = vmatpush1.bf16.msra.mxu1 %v1784_v33 }
 0x22d   :  { %1171 = vmatprep.subr.bf16.mxu1 %v1789_v34 }
 0x230   :  { %1172 = vmatpush1.bf16.msra.mxu1 %v1787_v35 }
 0x231   :  { %1173 = vmatprep.subr.bf16.mxu1 %v1792_v36 }
 0x234   :  { %1174 = vmatpush1.bf16.msra.mxu1 %v1790_v37 }
 0x235   :  { %1175 = vmatprep.subr.bf16.mxu1 %v1795_v38 }
 0x238   :  { %1176 = vmatpush1.bf16.msra.mxu1 %v1793_v39 }
 0x239   :  { %1177 = vmatprep.subr.bf16.mxu1 %v1798_v40 }
 0x23c   :  { %1178 = vmatpush1.bf16.msra.mxu1 %v1796_v41 }
 0x23d   :  { %1179 = vmatprep.subr.bf16.mxu1 %v1801_v42 }
 0x240   :  { %1180 = vmatpush1.bf16.msra.mxu1 %v1799_v43 }
 0x241   :  { %1181 = vmatprep.subr.bf16.mxu1 %v1804_v44 }
 0x244   :  { %1182 = vmatpush1.bf16.msra.mxu1 %v1802_v45 }
 0x245   :  { %1183 = vmatprep.subr.bf16.mxu1 %v1807_v46 }
 0x248   :  { %1184 = vmatpush1.bf16.msra.mxu1 %v1805_v47 }
 0x249   :  { %1185 = vmatprep.subr.bf16.mxu1 %v1810_v48 }
 0x24c   :  { %1186 = vmatpush1.bf16.msra.mxu1 %v1808_v49 }
 0x24d   :  { %1187 = vmatprep.subr.bf16.mxu1 %v1813_v50  ;;  %v1580_v50 = vld [vmem:[%s2153_s9] ss:$0 sm:$0xff] }
 0x250   :  { %1188 = vmatpush1.bf16.msra.mxu1 %v1811_v51 }
 0x251   :  { %1189 = vmatprep.subr.bf16.mxu1 %v1816_v52 }
 0x254   :  { %1190 = vmatpush1.bf16.msra.mxu1 %v1814_v53 }
 0x255   :  { %1191 = vmatprep.subr.bf16.mxu1 %v1819_v54 }
 0x258   :  { %1192 = vmatpush1.bf16.msra.mxu1 %v1817_v55  ;;  %v1581_v55 = vld [vmem:[%s2153_s9 + $0x1] ss:$0 sm:$0xff] }
 0x259   :  { %1193 = vmatprep.subr.bf16.mxu1 %v1822_v56 }
 0x25c   :  { %v707_v63 = vpop.f32.mrb[4].mxu0  ;;  %1194 = vmatpush1.bf16.msra.mxu1 %v1820_v59 }
 0x25d   :  { %v708_v1 = vadd.f32 %v707_v63, %v301_v60  ;;  %v709_v2 = vpop.f32.mrb[5].mxu0  ;;  %1195 = vmatprep.subr.bf16.mxu1 %v1825_v61 }
 0x25e   :  { %v710_v5 = vadd.f32 %v709_v2, %v305_v62  ;;  %v711_v7 = vpop.f32.mrb[6].mxu0 }
 0x25f   :  { %v712_v9 = vadd.f32 %v711_v7, %v301_v60  ;;  %v713_v10 = vpop.f32.mrb[7].mxu0  ;;  %v718_v12 = vmax.f32 %v708_v1, 0.0 }
 0x260   :  { %v714_v3 = vadd.f32 %v713_v10, %v305_v62  ;;  %1196 = vmatpush1.bf16.msra.mxu1 %v1823_v0  ;;  %v719_v15 = vmax.f32 %v710_v5, 0.0 }
 0x261   :  { %v722_v13 = vmax.f32 %v712_v9, 0.0  ;;  %1197 = vmatprep.subr.bf16.mxu1 %v1828_v4 }
 0x262   :  { %v723_v16 = vmax.f32 %v714_v3, 0.0 }
 0x263   :  { %v726_v14 = vpack.c.bf16 %v722_v13, %v718_v12 }
 0x264   :  { %v727_v17 = vpack.c.bf16 %v723_v16, %v719_v15  ;;  %1198 = vmatpush1.bf16.msra.mxu1 %v1826_v11 }
 0x266   :  { %1199 = vmatprep.mubr.bf16.mxu1 %v727_v17 }
 0x267   :  { %1200 = vmatmul.mubr.bf16.vlgmr.msra.gmra.mrb[4].mxu1 %v726_v14 }
 0x33a   :  { %v1201_v26 = vpop.f32.mrb[4].mxu1 }
 0x33b   :  { %v1604_v27 = vadd.f32 %v1201_v26, %v797_v24  ;;  %v1203_v28 = vpop.f32.mrb[5].mxu1 }
 0x33c   :  { %v1605_v29 = vadd.f32 %v1203_v28, %v801_v25  ;;  %v1205_v30 = vpop.f32.mrb[6].mxu1 }
 0x33d   :  { %v1606_v31 = vadd.f32 %v1205_v30, %v797_v24  ;;  %v1207_v32 = vpop.f32.mrb[7].mxu1  ;;  %v1210_v34 = vmax.f32 %v1604_v27, 0.0 }
 0x33e   :  { %v1607_v33 = vadd.f32 %v1207_v32, %v801_v25  ;;  %v1211_v36 = vmax.f32 %v1605_v29, 0.0 }
 0x33f   :  { %v1212_v35 = vmax.f32 %v1606_v31, 0.0 }
 0x340   :  { %v1213_v37 = vmax.f32 %v1607_v33, 0.0 }
 0x341   :  { %v1214_v38 = vpack.c.bf16 %v1212_v35, %v1210_v34 }
 0x342   :  { %v1215_v39 = vpack.c.bf16 %v1213_v37, %v1211_v36 }
 0x344   :  { %1383 = vmatprep.mubr.bf16.mxu0 %v1215_v39 }
 0x345   :  { %1384 = vmatmul.mubr.bf16.vlgmr.msra.gmra.mrb[8].mxu0 %v1214_v38 }
 0x418   :  { %v1598_v40 = vpop.f32.mrb[8].mxu0 }
 0x419   :  { %v1599_v8 = vpop.f32.mrb[9].mxu0 }
 0x41a   :  { %v1600_v41 = vadd.f32 %v1599_v8, %v1598_v40  ;;  %v1601_v42 = vpop.f32.mrb[10].mxu0 }
 0x41b   :  { %v1602_v43 = vpop.f32.mrb[11].mxu0 }
 0x41c   :  { %v1386_v44 = vadd.f32 %v1600_v41, %v1563_v6  ;;  %v1603_v45 = vadd.f32 %v1602_v43, %v1601_v42 }
 0x41e   :  { %v1389_v46 = vadd.f32 %v1603_v45, %v1563_v6  ;;  %v1392_v47 = vmax.f32 %v1386_v44, 0.0 }
 0x420   :  { %v1393_v48 = vmax.f32 %v1389_v46, 0.0 }
 0x422   :  { %v1394_v49 = vpack.c.bf16 %v1393_v48, %v1392_v47 }
 0x424   :  { %v1395_v51 = vunpack.c.l.bf16 %v1394_v49  ;;  %v1396_v53 = vunpack.c.h.bf16 %v1394_v49 }
 0x426   :  { %v1402_v52 = vmul.f32 %v1580_v50, %v1395_v51  ;;  %v1403_v54 = vmul.f32 %v1580_v50, %v1396_v53 }
 0x428   :  { %1404 = vadd.xlane.f32.xlu0 %v1402_v52 }
 0x42c   :  { %1406 = vadd.xlane.f32.xlu0 %v1403_v54 }
 0x4b5   :  { %v1405_v56 = vpop.xlane.xlu0 %1404 }
 0x4b6   :  { %v1413_v57 = vadd.f32 %v1581_v55, %v1405_v56 }
 0x4b8   :  { %1416 = vst.msk [vmem:[%s2154_s10] sm:$0xff] %vm1415_vm1, %v1413_v57 }
 0x4b9   :  { %v1407_v58 = vpop.xlane.xlu0 %1406 }
 0x4ba   :  { %v1414_v59 = vadd.f32 %v1581_v55, %v1407_v58 }
 0x4bc   :  { %1417 = vst.msk [vmem:[%s2154_s10 + $0x8] sm:$0xff] %vm1415_vm1, %v1414_v59 }
 0x4bd   :  { %1422 = vsyncpa [#allocation3], 1 }
 0x4be   :  { %1423 = vsyncpa [#allocation5], 1 }
 0x4bf   :  { %1424 = vsyncpa [#allocation8], 1 }

</bundles_post_ra>
